<compile_context>
chip_gen: v5e
topology: v5e:2x2
jax: 0.10.0
libtpu: 0.0.40
codegen_flags: <defaults>
</compile_context>

<pallas_src>
import jax
import jax.numpy as jnp
from jax import lax
from jax.experimental import pallas as pl
from jax.experimental.pallas import tpu as pltpu


def _poscnn_kernel(x_ref, w_ref, b_ref, o_ref, xp_ref):
    # x_ref : (1, H, W, Ct)    full-height input tile (resident across h strips)
    # w_ref : (9, Ct) f32      depthwise taps, k = dh*3 + dw (center tap has the
    #                          identity residual folded in by the wrapper)
    # b_ref : (1, Ct) f32      bias
    # o_ref : (1, TH, W, Ct)   output strip (TH consecutive rows of H)
    # xp_ref: (TH+2, W+2, Ct)  f32 VMEM scratch: zero-halo strip
    _, H, W, Ct = x_ref.shape
    TH = o_ref.shape[1]
    h = pl.program_id(2)
    nh = pl.num_programs(2)
    row0 = pl.multiple_of(h * TH, TH)
    f32 = jnp.float32

    # --- build the zero-padded f32 halo strip; zero only the 1-element border
    #     (the interior is fully overwritten below).
    xp_ref[0:1, :, :] = jnp.zeros((1, W + 2, Ct), f32)
    xp_ref[TH + 1:TH + 2, :, :] = jnp.zeros((1, W + 2, Ct), f32)
    xp_ref[:, 0:1, :] = jnp.zeros((TH + 2, 1, Ct), f32)
    xp_ref[:, W + 1:W + 2, :] = jnp.zeros((TH + 2, 1, Ct), f32)

    # interior: rows row0 .. row0+TH-1 of the input, cast to f32 exactly once
    xp_ref[1:TH + 1, 1:W + 1, :] = x_ref[0, pl.ds(row0, TH), :, :].astype(f32)

    # halo rows from the neighbouring strips (stay zero at the image boundary)
    @pl.when(h > 0)
    def _():
        xp_ref[0:1, 1:W + 1, :] = x_ref[0, pl.ds(row0 - 1, 1), :, :].astype(f32)

    @pl.when(h < nh - 1)
    def _():
        xp_ref[TH + 1:TH + 2, 1:W + 1, :] = (
            x_ref[0, pl.ds(row0 + TH, 1), :, :].astype(f32))

    # --- 9-tap depthwise conv.  Residual is already folded into the center
    #     tap; the accumulator starts from the bias.  dw outer so only 3
    #     sublane-offset (W) extractions happen per step; dh slices the major
    #     H axis, which is free.
    w = w_ref[...]                                          # (9, Ct) f32, one load
    acc = jnp.broadcast_to(b_ref[0, :][None, None, :], (TH, W, Ct))
    for dw in range(3):                                     # statically unrolled
        x_dw = xp_ref[:, dw:dw + W, :]                      # (TH+2, W, Ct)
        for dh in range(3):
            acc = acc + x_dw[dh:dh + TH, :, :] * w[dh * 3 + dw, :][None, None, :]
    o_ref[0] = acc.astype(o_ref.dtype)


def _pick_h_tile(H, target=8):
    """A strip height that divides H: H itself if small, else the largest
    divisor of H in [3, target] (falls back to H)."""
    if H <= 2 * target:
        return H
    for t in range(target, 2, -1):
        if H % t == 0:
            return t
    return H


def pos_cnn_forward(x, H, W, weight9, bias, s=1):
    """CPVT PosCNN forward.

    x       : (B, N, C) tokens, N = H*W (row-major over H, W).
    weight9 : (9, C) depthwise taps; row k = dh*3 + dw of the PyTorch
              Conv2d(C, C, 3, 1, 1, groups=C) weight of shape (C, 1, 3, 3).
    bias    : (C,)
    """
    assert s == 1, "only s == 1 implemented"
    # TODO(synk): s > 1 path (strided depthwise conv, no residual) not implemented.
    B, N, C = x.shape
    assert N == H * W

    # Fold the identity residual into the center tap in f32 (exact parity with
    # the f32 reference, even for bf16 params): conv(x) + x == conv_{w[4]+=1}(x).
    w_eff = weight9.astype(jnp.float32).at[4].add(1.0)
    b_eff = bias.astype(jnp.float32).reshape(1, C)

    # Channel tiling: lane-dense 128 tiles when possible; for C <= 128 use the
    # full channel dim (no HBM pad/slice round trip).  Pad only in the rare
    # C > 128 non-multiple case.
    if C % 128 == 0:
        c_tile, Cp = 128, C
    elif C <= 128:
        c_tile, Cp = C, C
    else:
        Cp = int(pl.cdiv(C, 128)) * 128
        c_tile = 128
    cn = Cp // c_tile

    xr = x.reshape(B, H, W, C)                     # NHWC view of the tokens
    if Cp != C:
        pad_c = Cp - C
        xr = jnp.pad(xr, ((0, 0), (0, 0), (0, 0), (0, pad_c)))
        w_eff = jnp.pad(w_eff, ((0, 0), (0, pad_c)))
        b_eff = jnp.pad(b_eff, ((0, 0), (0, pad_c)))

    # Spatial strips over H (strip height divides H -> no OOB reads, no ragged
    # strips); gives v7x's two TensorCores work even at B=1, C<=128 and bounds
    # the per-step f32 accumulator.
    th = _pick_h_tile(H)
    nh = H // th

    itemsize = jnp.dtype(x.dtype).itemsize
    in_block = H * W * c_tile * itemsize                    # full-height input tile
    out_block = th * W * c_tile * itemsize
    scratch = (th + 2) * (W + 2) * c_tile * 4
    temps = (th * W + (th + 2) * W) * c_tile * 4            # acc + per-dw shifted slab
    params = 2 * 10 * c_tile * 4
    vmem_est = 2 * (in_block + out_block) + scratch + temps + params
    # Clamp to <= 48 MiB so the request is always valid on v7x's 64 MiB VMEM.
    vmem_limit = int(min(48 * 1024 * 1024, max(32 * 1024 * 1024, 2 * vmem_est)))

    cost = pl.CostEstimate(
        flops=2 * 9 * B * H * W * Cp,
        transcendentals=0,
        bytes_accessed=2 * B * H * W * Cp * itemsize + 10 * Cp * 4,
    )

    out = pl.pallas_call(
        _poscnn_kernel,
        out_shape=jax.ShapeDtypeStruct((B, H, W, Cp), x.dtype),
        grid_spec=pltpu.PrefetchScalarGridSpec(
            num_scalar_prefetch=0,
            # channel tiles outermost (weights/bias stay resident), H strips
            # innermost (the full-height input tile stays resident across them).
            grid=(cn, B, nh),
            in_specs=[
                pl.BlockSpec((1, H, W, c_tile), lambda c, b, h: (b, 0, 0, c)),
                pl.BlockSpec((9, c_tile), lambda c, b, h: (0, c)),
                pl.BlockSpec((1, c_tile), lambda c, b, h: (0, c)),
            ],
            out_specs=pl.BlockSpec((1, th, W, c_tile),
                                   lambda c, b, h: (b, h, 0, c)),
            scratch_shapes=[pltpu.VMEM((th + 2, W + 2, c_tile), jnp.float32)],
        ),
        compiler_params=pltpu.CompilerParams(
            dimension_semantics=("parallel", "parallel", "parallel"),
            vmem_limit_bytes=vmem_limit,
        ),
        cost_estimate=cost,
    )(xr, w_eff, b_eff)

    if Cp != C:
        out = out[..., :C]
    return out.reshape(B, N, C)


def _reference(x, H, W, weight9, bias):
    """Pure-JAX reference: depthwise 3x3 conv (pad=1) + bias + residual."""
    B, N, C = x.shape
    cnn = x.reshape(B, H, W, C)
    # weight9 is (9, C) with k = dh*3 + dw  ->  HWIO kernel (3, 3, 1, C)
    w_hwio = weight9.reshape(3, 3, C)[:, :, None, :]
    conv = lax.conv_general_dilated(
        cnn.astype(jnp.float32), w_hwio.astype(jnp.float32),
        window_strides=(1, 1), padding=((1, 1), (1, 1)),
        dimension_numbers=("NHWC", "HWIO", "NHWC"),
        feature_group_count=C)
    out = conv + bias[None, None, None, :].astype(jnp.float32) + cnn.astype(jnp.float32)
    return out.reshape(B, N, C).astype(x.dtype)


if __name__ == "__main__":
    key = jax.random.PRNGKey(0)

    def make_case(k, B, H, W, C, dtype):
        kx, kw, kb = jax.random.split(k, 3)
        N = H * W
        x = jax.random.normal(kx, (B, N, C), dtype=dtype)
        weight9 = (jax.random.normal(kw, (9, C), dtype=dtype) * 0.1).astype(dtype)
        bias = (jax.random.normal(kb, (C,), dtype=dtype) * 0.1).astype(dtype)
        return x, weight9, bias

    cases = [
        # (B, H, W, C, dtype, atol, rtol)
        (2, 8, 8, 32, jnp.float32, 1e-4, 1e-4),    # C<128 full-channel block (no pad round trip)
        (2, 10, 12, 256, jnp.float32, 1e-4, 1e-4), # two channel tiles, odd spatial dims
        (1, 24, 16, 64, jnp.float32, 1e-4, 1e-4),  # H strips (th=8, nh=3): halo pl.when paths
        (1, 24, 16, 64, jnp.bfloat16, 3e-2, 3e-2), # bf16 activations, f32 residual fold
    ]
    subkeys = jax.random.split(key, len(cases))
    for (B, H, W, C, dtype, atol, rtol), kc in zip(cases, subkeys):
        x, weight9, bias = make_case(kc, B, H, W, C, dtype)
        out = pos_cnn_forward(x, H, W, weight9, bias, s=1)
        out = jax.block_until_ready(out)
        ref = _reference(x, H, W, weight9, bias)
        assert out.shape == (B, H * W, C)
        assert jnp.allclose(out.astype(jnp.float32), ref.astype(jnp.float32),
                            atol=atol, rtol=rtol), (
            f"mismatch vs reference for case B={B} H={H} W={W} C={C} dtype={dtype}")

    print("KERNEL_OK")
</pallas_src>

<mosaic_0001>
module attributes {stable_mosaic.version = 11 : i64} {
  func.func @_poscnn_kernel(%arg0: i32, %arg1: i32, %arg2: i32, %arg3: memref<1x8x8x32xf32, #tpu.memory_space<vmem>>, %arg4: memref<9x32xf32, #tpu.memory_space<vmem>>, %arg5: memref<1x32xf32, #tpu.memory_space<vmem>>, %arg6: memref<1x8x8x32xf32, #tpu.memory_space<vmem>>, %arg7: memref<10x10x32xf32, #tpu.memory_space<vmem>>) attributes {dimension_semantics = [#tpu.dimension_semantics<parallel>, #tpu.dimension_semantics<parallel>, #tpu.dimension_semantics<parallel>], iteration_bounds = array<i64: 1, 2, 1>, scalar_prefetch = 0 : i64, scratch_operands = 1 : i64, tpu.core_type = #tpu.core_type<tc>, window_params = [{transform_indices = @transform_0, window_bounds = array<i64: 1, 8, 8, 32>}, {transform_indices = @transform_1, window_bounds = array<i64: 9, 32>}, {transform_indices = @transform_2, window_bounds = array<i64: 1, 32>}, {transform_indices = @transform_3, window_bounds = array<i64: 1, 8, 8, 32>}]} {
    %c8_i32 = arith.constant 8 : i32
    %0 = arith.muli %arg2, %c8_i32 : i32
    %1 = tpu.assume_multiple %0, 8 : i32
    %cst = arith.constant 0.000000e+00 : f32
    %2 = vector.broadcast %cst : f32 to vector<1x10x32xf32>
    %c0 = arith.constant 0 : index
    %c0_0 = arith.constant 0 : index
    %c0_1 = arith.constant 0 : index
    %3 = vector.load %arg7[%c0, %c0_0, %c0_1] : memref<10x10x32xf32, #tpu.memory_space<vmem>>, vector<1x10x32xf32>
    tpu.vector_store %arg7[%c0, %c0_0, %c0_1], %2 {strides = array<i32>} : memref<10x10x32xf32, #tpu.memory_space<vmem>>, vector<1x10x32xf32>,
    %cst_2 = arith.constant 0.000000e+00 : f32
    %4 = vector.broadcast %cst_2 : f32 to vector<1x10x32xf32>
    %c9 = arith.constant 9 : index
    %c0_3 = arith.constant 0 : index
    %c0_4 = arith.constant 0 : index
    %5 = vector.load %arg7[%c9, %c0_3, %c0_4] : memref<10x10x32xf32, #tpu.memory_space<vmem>>, vector<1x10x32xf32>
    tpu.vector_store %arg7[%c9, %c0_3, %c0_4], %4 {strides = array<i32>} : memref<10x10x32xf32, #tpu.memory_space<vmem>>, vector<1x10x32xf32>,
    %cst_5 = arith.constant 0.000000e+00 : f32
    %6 = vector.broadcast %cst_5 : f32 to vector<10x1x32xf32>
    %c0_6 = arith.constant 0 : index
    %c0_7 = arith.constant 0 : index
    %c0_8 = arith.constant 0 : index
    %7 = vector.load %arg7[%c0_6, %c0_7, %c0_8] : memref<10x10x32xf32, #tpu.memory_space<vmem>>, vector<10x1x32xf32>
    tpu.vector_store %arg7[%c0_6, %c0_7, %c0_8], %6 {strides = array<i32>} : memref<10x10x32xf32, #tpu.memory_space<vmem>>, vector<10x1x32xf32>,
    %cst_9 = arith.constant 0.000000e+00 : f32
    %8 = vector.broadcast %cst_9 : f32 to vector<10x1x32xf32>
    %c0_10 = arith.constant 0 : index
    %c9_11 = arith.constant 9 : index
    %c0_12 = arith.constant 0 : index
    %9 = vector.load %arg7[%c0_10, %c9_11, %c0_12] : memref<10x10x32xf32, #tpu.memory_space<vmem>>, vector<10x1x32xf32>
    tpu.vector_store %arg7[%c0_10, %c9_11, %c0_12], %8 {strides = array<i32>} : memref<10x10x32xf32, #tpu.memory_space<vmem>>, vector<10x1x32xf32>,
    %c0_13 = arith.constant 0 : index
    %10 = arith.index_cast %1 : i32 to index
    %c0_14 = arith.constant 0 : index
    %c0_15 = arith.constant 0 : index
    %11 = vector.load %arg3[%c0_13, %10, %c0_14, %c0_15] : memref<1x8x8x32xf32, #tpu.memory_space<vmem>>, vector<1x8x8x32xf32>
    %12 = vector.shape_cast %11 : vector<1x8x8x32xf32> to vector<8x8x32xf32>
    %c1 = arith.constant 1 : index
    %c1_16 = arith.constant 1 : index
    %c0_17 = arith.constant 0 : index
    %13 = vector.load %arg7[%c1, %c1_16, %c0_17] : memref<10x10x32xf32, #tpu.memory_space<vmem>>, vector<8x8x32xf32>
    tpu.vector_store %arg7[%c1, %c1_16, %c0_17], %12 {strides = array<i32>} : memref<10x10x32xf32, #tpu.memory_space<vmem>>, vector<8x8x32xf32>,
    %c0_i32 = arith.constant 0 : i32
    %14 = arith.cmpi sgt, %arg2, %c0_i32 : i32
    %15 = arith.extui %14 : i1 to i32
    %c0_i32_18 = arith.constant 0 : i32
    %16 = arith.cmpi ne, %15, %c0_i32_18 : i32
    scf.if %16 {
      %c1_i32 = arith.constant 1 : i32
      %95 = arith.subi %1, %c1_i32 : i32
      %c0_37 = arith.constant 0 : index
      %96 = arith.index_cast %95 : i32 to index
      %c0_38 = arith.constant 0 : index
      %c0_39 = arith.constant 0 : index
      %97 = vector.load %arg3[%c0_37, %96, %c0_38, %c0_39] : memref<1x8x8x32xf32, #tpu.memory_space<vmem>>, vector<1x1x8x32xf32>
      %98 = vector.shape_cast %97 : vector<1x1x8x32xf32> to vector<1x8x32xf32>
      %c0_40 = arith.constant 0 : index
      %c1_41 = arith.constant 1 : index
      %c0_42 = arith.constant 0 : index
      %99 = vector.load %arg7[%c0_40, %c1_41, %c0_42] : memref<10x10x32xf32, #tpu.memory_space<vmem>>, vector<1x8x32xf32>
      tpu.vector_store %arg7[%c0_40, %c1_41, %c0_42], %98 {strides = array<i32>} : memref<10x10x32xf32, #tpu.memory_space<vmem>>, vector<1x8x32xf32>,
    } else {
    }
    %c0_i32_19 = arith.constant 0 : i32
    %17 = arith.cmpi slt, %arg2, %c0_i32_19 : i32
    %18 = arith.extui %17 : i1 to i32
    %c0_i32_20 = arith.constant 0 : i32
    %19 = arith.cmpi ne, %18, %c0_i32_20 : i32
    scf.if %19 {
      %c8_i32_37 = arith.constant 8 : i32
      %95 = arith.addi %1, %c8_i32_37 : i32
      %c0_38 = arith.constant 0 : index
      %96 = arith.index_cast %95 : i32 to index
      %c0_39 = arith.constant 0 : index
      %c0_40 = arith.constant 0 : index
      %97 = vector.load %arg3[%c0_38, %96, %c0_39, %c0_40] : memref<1x8x8x32xf32, #tpu.memory_space<vmem>>, vector<1x1x8x32xf32>
      %98 = vector.shape_cast %97 : vector<1x1x8x32xf32> to vector<1x8x32xf32>
      %c9_41 = arith.constant 9 : index
      %c1_42 = arith.constant 1 : index
      %c0_43 = arith.constant 0 : index
      %99 = vector.load %arg7[%c9_41, %c1_42, %c0_43] : memref<10x10x32xf32, #tpu.memory_space<vmem>>, vector<1x8x32xf32>
      tpu.vector_store %arg7[%c9_41, %c1_42, %c0_43], %98 {strides = array<i32>} : memref<10x10x32xf32, #tpu.memory_space<vmem>>, vector<1x8x32xf32>,
    } else {
    }
    %c0_21 = arith.constant 0 : index
    %c0_22 = arith.constant 0 : index
    %20 = vector.load %arg4[%c0_21, %c0_22] : memref<9x32xf32, #tpu.memory_space<vmem>>, vector<9x32xf32>
    %c0_23 = arith.constant 0 : index
    %c0_24 = arith.constant 0 : index
    %21 = vector.load %arg5[%c0_23, %c0_24] : memref<1x32xf32, #tpu.memory_space<vmem>>, vector<1x32xf32>
    %22 = vector.shape_cast %21 : vector<1x32xf32> to vector<32xf32>
    %23 = vector.shape_cast %22 : vector<32xf32> to vector<1x1x32xf32>
    %24 = vector.shape_cast %23 : vector<1x1x32xf32> to vector<1x1x32xf32>
    %25 = vector.broadcast %24 : vector<1x1x32xf32> to vector<8x8x32xf32>
    %c0_25 = arith.constant 0 : index
    %c0_26 = arith.constant 0 : index
    %c0_27 = arith.constant 0 : index
    %26 = vector.load %arg7[%c0_25, %c0_26, %c0_27] : memref<10x10x32xf32, #tpu.memory_space<vmem>>, vector<10x8x32xf32>
    %27 = vector.extract_strided_slice %26 {offsets = [0, 0, 0], sizes = [8, 8, 32], strides = [1, 1, 1]} : vector<10x8x32xf32> to vector<8x8x32xf32>
    %28 = vector.extract_strided_slice %20 {offsets = [0, 0], sizes = [1, 32], strides = [1, 1]} : vector<9x32xf32> to vector<1x32xf32>
    %29 = vector.shape_cast %28 : vector<1x32xf32> to vector<32xf32>
    %30 = vector.shape_cast %29 : vector<32xf32> to vector<1x1x32xf32>
    %31 = vector.broadcast %30 : vector<1x1x32xf32> to vector<8x8x32xf32>
    %32 = arith.mulf %27, %31 : vector<8x8x32xf32>
    %33 = arith.addf %25, %32 : vector<8x8x32xf32>
    %34 = vector.extract_strided_slice %26 {offsets = [1, 0, 0], sizes = [8, 8, 32], strides = [1, 1, 1]} : vector<10x8x32xf32> to vector<8x8x32xf32>
    %35 = vector.extract_strided_slice %20 {offsets = [3, 0], sizes = [1, 32], strides = [1, 1]} : vector<9x32xf32> to vector<1x32xf32>
    %36 = vector.shape_cast %35 : vector<1x32xf32> to vector<32xf32>
    %37 = vector.shape_cast %36 : vector<32xf32> to vector<1x1x32xf32>
    %38 = vector.broadcast %37 : vector<1x1x32xf32> to vector<8x8x32xf32>
    %39 = arith.mulf %34, %38 : vector<8x8x32xf32>
    %40 = arith.addf %33, %39 : vector<8x8x32xf32>
    %41 = vector.extract_strided_slice %26 {offsets = [2, 0, 0], sizes = [8, 8, 32], strides = [1, 1, 1]} : vector<10x8x32xf32> to vector<8x8x32xf32>
    %42 = vector.extract_strided_slice %20 {offsets = [6, 0], sizes = [1, 32], strides = [1, 1]} : vector<9x32xf32> to vector<1x32xf32>
    %43 = vector.shape_cast %42 : vector<1x32xf32> to vector<32xf32>
    %44 = vector.shape_cast %43 : vector<32xf32> to vector<1x1x32xf32>
    %45 = vector.broadcast %44 : vector<1x1x32xf32> to vector<8x8x32xf32>
    %46 = arith.mulf %41, %45 : vector<8x8x32xf32>
    %47 = arith.addf %40, %46 : vector<8x8x32xf32>
    %c0_28 = arith.constant 0 : index
    %c1_29 = arith.constant 1 : index
    %c0_30 = arith.constant 0 : index
    %48 = vector.load %arg7[%c0_28, %c1_29, %c0_30] : memref<10x10x32xf32, #tpu.memory_space<vmem>>, vector<10x8x32xf32>
    %49 = vector.extract_strided_slice %48 {offsets = [0, 0, 0], sizes = [8, 8, 32], strides = [1, 1, 1]} : vector<10x8x32xf32> to vector<8x8x32xf32>
    %50 = vector.extract_strided_slice %20 {offsets = [1, 0], sizes = [1, 32], strides = [1, 1]} : vector<9x32xf32> to vector<1x32xf32>
    %51 = vector.shape_cast %50 : vector<1x32xf32> to vector<32xf32>
    %52 = vector.shape_cast %51 : vector<32xf32> to vector<1x1x32xf32>
    %53 = vector.broadcast %52 : vector<1x1x32xf32> to vector<8x8x32xf32>
    %54 = arith.mulf %49, %53 : vector<8x8x32xf32>
    %55 = arith.addf %47, %54 : vector<8x8x32xf32>
    %56 = vector.extract_strided_slice %48 {offsets = [1, 0, 0], sizes = [8, 8, 32], strides = [1, 1, 1]} : vector<10x8x32xf32> to vector<8x8x32xf32>
    %57 = vector.extract_strided_slice %20 {offsets = [4, 0], sizes = [1, 32], strides = [1, 1]} : vector<9x32xf32> to vector<1x32xf32>
    %58 = vector.shape_cast %57 : vector<1x32xf32> to vector<32xf32>
    %59 = vector.shape_cast %58 : vector<32xf32> to vector<1x1x32xf32>
    %60 = vector.broadcast %59 : vector<1x1x32xf32> to vector<8x8x32xf32>
    %61 = arith.mulf %56, %60 : vector<8x8x32xf32>
    %62 = arith.addf %55, %61 : vector<8x8x32xf32>
    %63 = vector.extract_strided_slice %48 {offsets = [2, 0, 0], sizes = [8, 8, 32], strides = [1, 1, 1]} : vector<10x8x32xf32> to vector<8x8x32xf32>
    %64 = vector.extract_strided_slice %20 {offsets = [7, 0], sizes = [1, 32], strides = [1, 1]} : vector<9x32xf32> to vector<1x32xf32>
    %65 = vector.shape_cast %64 : vector<1x32xf32> to vector<32xf32>
    %66 = vector.shape_cast %65 : vector<32xf32> to vector<1x1x32xf32>
    %67 = vector.broadcast %66 : vector<1x1x32xf32> to vector<8x8x32xf32>
    %68 = arith.mulf %63, %67 : vector<8x8x32xf32>
    %69 = arith.addf %62, %68 : vector<8x8x32xf32>
    %c0_31 = arith.constant 0 : index
    %c2 = arith.constant 2 : index
    %c0_32 = arith.constant 0 : index
    %70 = vector.load %arg7[%c0_31, %c2, %c0_32] : memref<10x10x32xf32, #tpu.memory_space<vmem>>, vector<10x8x32xf32>
    %71 = vector.extract_strided_slice %70 {offsets = [0, 0, 0], sizes = [8, 8, 32], strides = [1, 1, 1]} : vector<10x8x32xf32> to vector<8x8x32xf32>
    %72 = vector.extract_strided_slice %20 {offsets = [2, 0], sizes = [1, 32], strides = [1, 1]} : vector<9x32xf32> to vector<1x32xf32>
    %73 = vector.shape_cast %72 : vector<1x32xf32> to vector<32xf32>
    %74 = vector.shape_cast %73 : vector<32xf32> to vector<1x1x32xf32>
    %75 = vector.broadcast %74 : vector<1x1x32xf32> to vector<8x8x32xf32>
    %76 = arith.mulf %71, %75 : vector<8x8x32xf32>
    %77 = arith.addf %69, %76 : vector<8x8x32xf32>
    %78 = vector.extract_strided_slice %70 {offsets = [1, 0, 0], sizes = [8, 8, 32], strides = [1, 1, 1]} : vector<10x8x32xf32> to vector<8x8x32xf32>
    %79 = vector.extract_strided_slice %20 {offsets = [5, 0], sizes = [1, 32], strides = [1, 1]} : vector<9x32xf32> to vector<1x32xf32>
    %80 = vector.shape_cast %79 : vector<1x32xf32> to vector<32xf32>
    %81 = vector.shape_cast %80 : vector<32xf32> to vector<1x1x32xf32>
    %82 = vector.broadcast %81 : vector<1x1x32xf32> to vector<8x8x32xf32>
    %83 = arith.mulf %78, %82 : vector<8x8x32xf32>
    %84 = arith.addf %77, %83 : vector<8x8x32xf32>
    %85 = vector.extract_strided_slice %70 {offsets = [2, 0, 0], sizes = [8, 8, 32], strides = [1, 1, 1]} : vector<10x8x32xf32> to vector<8x8x32xf32>
    %86 = vector.extract_strided_slice %20 {offsets = [8, 0], sizes = [1, 32], strides = [1, 1]} : vector<9x32xf32> to vector<1x32xf32>
    %87 = vector.shape_cast %86 : vector<1x32xf32> to vector<32xf32>
    %88 = vector.shape_cast %87 : vector<32xf32> to vector<1x1x32xf32>
    %89 = vector.broadcast %88 : vector<1x1x32xf32> to vector<8x8x32xf32>
    %90 = arith.mulf %85, %89 : vector<8x8x32xf32>
    %91 = arith.addf %84, %90 : vector<8x8x32xf32>
    %c0_33 = arith.constant 0 : index
    %c0_34 = arith.constant 0 : index
    %c0_35 = arith.constant 0 : index
    %c0_36 = arith.constant 0 : index
    %92 = vector.load %arg6[%c0_33, %c0_34, %c0_35, %c0_36] : memref<1x8x8x32xf32, #tpu.memory_space<vmem>>, vector<1x8x8x32xf32>
    %93 = vector.shape_cast %92 : vector<1x8x8x32xf32> to vector<8x8x32xf32>
    %94 = vector.shape_cast %91 : vector<8x8x32xf32> to vector<1x8x8x32xf32>
    tpu.vector_store %arg6[%c0_33, %c0_34, %c0_35, %c0_36], %94 {strides = array<i32>} : memref<1x8x8x32xf32, #tpu.memory_space<vmem>>, vector<1x8x8x32xf32>,
    return
  }
  func.func @transform_0(%arg0: i32, %arg1: i32, %arg2: i32) -> (i32, i32, i32, i32) {
    %c0_i32 = arith.constant 0 : i32
    %c0_i32_0 = arith.constant 0 : i32
    %c0_i32_1 = arith.constant 0 : i32
    return %arg1, %c0_i32, %c0_i32_0, %arg0 : i32, i32, i32, i32
  }
  func.func @transform_1(%arg0: i32, %arg1: i32, %arg2: i32) -> (i32, i32) {
    %c0_i32 = arith.constant 0 : i32
    %c0_i32_0 = arith.constant 0 : i32
    return %c0_i32, %arg0 : i32, i32
  }
  func.func @transform_2(%arg0: i32, %arg1: i32, %arg2: i32) -> (i32, i32) {
    %c0_i32 = arith.constant 0 : i32
    %c0_i32_0 = arith.constant 0 : i32
    return %c0_i32, %arg0 : i32, i32
  }
  func.func @transform_3(%arg0: i32, %arg1: i32, %arg2: i32) -> (i32, i32, i32, i32) {
    %c0_i32 = arith.constant 0 : i32
    %c0_i32_0 = arith.constant 0 : i32
    return %arg1, %arg2, %c0_i32, %arg0 : i32, i32, i32, i32
  }
}

</mosaic_0001>

<bundles_post_ra>
// kernel: tpu_custom_call.1
= control target key start
LH: loop header
LB: loop body
LE: loop exit
PB: predicated region body
PF: predicated region fallthrough
CT: control target
= control target key end

     0   :  { %s1257_s0 = inlined_call_operand.hbm [shape: f32[2,8,8,32], index: 0, kind: input, shape index: {}]   ;;  %s1258_s1 = inlined_call_operand.hbm [shape: f32[9,32], index: 1, kind: input, shape index: {}]   ;;  %s1259_s2 = inlined_call_operand.vmem [shape: f32[1,32], index: 2, kind: input, shape index: {}]   ;;  %s1260_s3 = inlined_call_operand.hbm [shape: f32[2,8,8,32], index: 3, kind: output, shape index: {}]  }
   0x1   :  { %1262 = sst [smem:[#allocation12_spill]] %s1258_s1 }
   0x2   :  { %8 = vsyncpa [#allocation4], 0 }
   0x3   :  { %10 = vsyncpa [#allocation4 + $0x1], 0 }
   0x4   :  { %11 = vsyncpa [#allocation7], 0 }
   0x5   :  { %12 = vsyncpa [#allocation5], 0 }
   0x6   :  { %14 = vsyncpa [#allocation5 + $0x1], 0  ;;  %s936_s12 = smov 0   ;;  %s938_s13 = smov 0  }
   0x7   :  { %s940_s14 = smov 0   ;;  %s942_s15 = smov 0  }
   0x8   :  { %s944_s16 = smov 0   ;;  %s946_s17 = smov 0  }
   0x9 LB: > { %s660_s18 = sadd.s32 4294967295, %s908_s17   ;;  %s661_s19 = sadd.s32 4294967294, %s908_s17   ;;  %s908_s17 = sphi %s946_s17, %s20_s17   ;;  %s904_s16 = sphi %s944_s16, %s1276_s16   ;;  %s900_s15 = sphi %s942_s15, %s1275_s15   ;;  %s896_s14 = sphi %s940_s14, %s1274_s14   ;;  %s892_s13 = sphi %s938_s13, %s1273_s13   ;;  %s888_s12 = sphi %s936_s12, %s1272_s12  }
   0xa   : > { %p61_p0 = scmp.ne.s32.totalorder %s892_s13, %s888_s12  ;;  %p970_p1 = scmp.eq.s32.totalorder %s660_s18, 0 }
   0xb   : > { %p974_p2 = scmp.eq.s32.totalorder %s660_s18, 1  ;;  %p147_p3 = scmp.eq.s32.totalorder %s661_s19, 1 }
   0xc   : > { %p980_p4 = por %p970_p1, %p61_p0  ;;  %p662_p5 = scmp.ge.s32.totalorder %s908_s17, 1 }
   0xd   : > { %p985_p6 = por %p147_p3, %p61_p0  ;;  %p154_p7 = scmp.lt.s32.totalorder %s908_s17, 3 }
   0xe   : > { %s1267_s1 = sld [smem:[#allocation12_spill]]  ;;  %s910_s28 = smov [#allocation6]  }
   0xf   : > { %p993_p8 = pnand %p662_p5, %p154_p7  ;;  %s169_s29 = sshll.u32 %s910_s28, 4  ;;  %s170_s29 = int_to_ptr.vmem [resolvable:$true] %s169_s29 }
  0x10   : > { %p665_p11 = scmp.ge.s32.totalorder %s908_s17, 2  ;;  %s1261_s30 = smov 128  }
  0x11   : > { %p690_p9 = pneg %p993_p8  ;;  %s912_s4 = smov 8  }
  0x12   : > { %s35_s5 = sadd.s32 1, %s904_s16  ;;  %s48_s6 = sadd.s32 1, %s896_s14 }
  0x13   : > { %p691_p10 = pnand %p690_p9, %p970_p1  ;;  %p37_p12 = scmp.ge.s32.totalorder %s35_s5, 2 }
  0x14   : > { %s167_s26 = sshll.u32 %s1267_s1, 4  ;;  %p55_p13 = scmp.ne.s32.totalorder %s896_s14, %s892_s13  ;;  %s168_s26 = int_to_ptr.hbm [resolvable:$true] %s167_s26 }
  0x15   : > { %693 = dma.hbm_to_vmem [thread:$0]  (!%p691_p10), %s168_s26, 256, %s170_s29, [#allocation7], %s1261_s30, %s1261_s30, %s912_s4  }
  0x16   : > { %p56_p0 = scmp.eq.s32.totalorder %s908_s17, 0  ;;  %s1278_s5 = smov (%p37_p12, %s35_s5), 0 }
  0x17   : > { %p1018_p5 = por %p974_p2, %p55_p13  ;;  %s43_s9 = ssub.s32 %s904_s16, %s1278_s5 }
  0x18   : > { %p1012_p3 = por %p56_p0, %p55_p13  ;;  %p703_p7 = scmp.lt.s32.totalorder %s908_s17, 2 }
  0x19   : > { %p46_p9 = scmp.eq.s32.totalorder %s43_s9, 0  ;;  %s189_s10 = sand.u32 1, %s896_s14  }
  0x1a   : > { %s666_s11 = sshll.u32 %s189_s10, 6  ;;  %s680_s19 = sshll.u32 %s904_s16, 6 }
  0x1b   : > { %s1027_s18 = scalar_select %p46_p9, %s896_s14, %s48_s6  }
  0x1c   : > { %s199_s26 = scalar_lea.hbm %s1257_s0, %s680_s19  ;;  %s193_s28 = scalar_lea.vmem [#allocation3], %s666_s11 }
  0x1d   : > { %s202_s29 = sshll.u32 %s193_s28, 4  ;;  %s200_s21 = sshll.u32 %s199_s26, 4  ;;  %s203_s29 = int_to_ptr.vmem [resolvable:$true] %s202_s29  ;;  %s201_s21 = int_to_ptr.hbm [resolvable:$true] %s200_s21 }
  0x1e   : > { %p695_p2 = pnand %p703_p7, %p1012_p3  ;;  %s190_s30 = scalar_lea.sflag [#allocation4], %s189_s10 }
  0x1f   : > { %s1271_s1 = smov 128   ;;  %214 = sbr.rel (%p993_p8) target bundleno = 121 (0x79), region = 32 }
  0x20   : > { %697 = dma.hbm_to_vmem [thread:$0]  (!%p695_p2), %s201_s21, 1024, %s203_s29, %s190_s30, %s1271_s1, %s1271_s1, %s912_s4  }
  0x21   : > { %s1041_s6 = sand.u32 (!%p993_p8), 1, %s892_s13  }
  0x22   : > { %s670_s9 = sshll.u32 (!%p993_p8), %s1041_s6, 6  ;;  %s217_s11 = scalar_lea.sflag (!%p993_p8), [#allocation4], %s1041_s6 }
  0x23   : > { %s1047_s7 = scalar_lea.vmem (!%p993_p8), [#allocation3], %s670_s9 }
  0x24   : > { %875 = dma.done.wait (%p980_p4), %s217_s11, 1024  }
  0x25   : > { %877 = vsyncadd (%p980_p4), %s217_s11, 4294966272 }
  0x26   : > { %879 = dma.done.wait (%p970_p1), [#allocation7], 256  }
  0x27   : > { %881 = vsyncadd (%p970_p1), [#allocation7], 4294967040  ;;  %vm257_vm0 = vcmask 261120   ;;  %vm259_vm1 = vcmask 254976   ;;  %v913_v0 = vmov 0.0   ;;  %vm264_vm2 = vcmask 253952  }
  0x28   : > { %258 = vst.msk [vmem:[#allocation2] sm:$0xff] %vm257_vm0, %v913_v0  ;;  %v322_v1 = vld [vmem:[#allocation6] sm:$0xff]  ;;  %v288_v3 = vld [vmem:[%s1047_s7 + $0x8] sm:$0xff]  ;;  %v289_v5 = vld [vmem:[%s1047_s7 + $0x10] sm:$0xff]  ;;  %s1161_s22 = scalar_lea.vmem [#allocation8], %s670_s9  ;;  %s681_s27 = sshll.u32 %s900_s15, 6 }
  0x29   : > { %262 = vst.msk [vmem:[#allocation2 + $0x90] sm:$0xff] %vm257_vm0, %v913_v0  ;;  %v287_v2 = vld [vmem:[%s1047_s7] sm:$0xff]  ;;  %v1080_v4 = vperm.slane %v322_v1, 0  ;;  %v290_v7 = vld [vmem:[%s1047_s7 + $0x18] sm:$0xff]  ;;  %v292_v9 = vld [vmem:[%s1047_s7 + $0x28] sm:$0xff]  ;;  %v1100_v14 = vperm.slane %v322_v1, 3  ;;  %s534_s10 = scalar_lea.hbm %s1260_s3, %s681_s27 }
  0x2a   : > { %260 = vst.msk [vmem:[#allocation2 + $0x8] sm:$0x3] %vm259_vm1, %v913_v0  ;;  %v291_v8 = vld [vmem:[%s1047_s7 + $0x20] sm:$0xff]  ;;  %v293_v12 = vld [vmem:[%s1047_s7 + $0x30] sm:$0xff]  ;;  %v294_v13 = vld [vmem:[%s1047_s7 + $0x38] sm:$0xff]  ;;  %v1105_v16 = vperm.slane %v322_v1, 6 }
  0x2b   : > { %263 = vst.msk [vmem:[#allocation2 + $0x98] sm:$0x3] %vm259_vm1, %v913_v0  ;;  %v1093_v10 = vld [vmem:[%s1259_s2] ss:$0 sm:$0xff]  ;;  %v1108_v18 = vperm.slane %v322_v1, 1  ;;  %v1110_v19 = vperm.slane %v322_v1, 2 }
  0x2c   : > { %265 = vst.msk [vmem:[#allocation2] sm:$0x1] %vm264_vm2, %v913_v0  ;;  %v1114_v25 = vperm.slane %v322_v1, 4  ;;  %v1116_v26 = vperm.slane %v322_v1, 7  ;;  %v1118_v27 = vperm.slane %v322_v1, 5  ;;  %s535_s15 = sshll.u32 %s1161_s22, 4  ;;  %s536_s15 = int_to_ptr.vmem [resolvable:$true] %s535_s15 }
  0x2d   : > { %266 = vst.msk [vmem:[#allocation2 + $0x10] sm:$0x1] %vm264_vm2, %v913_v0  ;;  %v1125_v38 = vld [vmem:[#allocation6 + $0x8] ss:$0 sm:$0xff]  ;;  %s537_s19 = sshll.u32 %s534_s10, 4  ;;  %s520_s24 = scalar_lea.sflag [#allocation5], %s1041_s6  ;;  %s538_s19 = int_to_ptr.hbm [resolvable:$true] %s537_s19 }
  0x2e   : > { %267 = vst.msk [vmem:[#allocation2 + $0x20] sm:$0x1] %vm264_vm2, %v913_v0  ;;  %s836_s25 = sshra.s32 %s538_s19, 4  ;;  %s842_s21 = scalar_lea.hbm %s1260_s3, 128  ;;  %s837_s25 = int_to_ptr.hbm [resolvable:$true] %s836_s25 }
  0x2f   : > { %268 = vst.msk [vmem:[#allocation2 + $0x30] sm:$0x1] %vm264_vm2, %v913_v0  ;;  %s838_s26 = scalar_lea.hbm %s837_s25, 64  ;;  %p843_p10 = scmp.lt.s32.totalorder %s837_s25, %s1260_s3 }
  0x30   : > { %269 = vst.msk [vmem:[#allocation2 + $0x40] sm:$0x1] %vm264_vm2, %v913_v0  ;;  %p839_p1 = scmp.ne.s32.totalorder %s837_s25, %s838_s26  ;;  %p844_p12 = scmp.lt.s32.totalorder %s842_s21, %s838_s26 }
  0x31   : > { %270 = vst.msk [vmem:[#allocation2 + $0x50] sm:$0x1] %vm264_vm2, %v913_v0  ;;  %v389_v22 = vld [vmem:[#allocation2 + $0x1] sm:$0xff] }
  0x32   : > { %271 = vst.msk [vmem:[#allocation2 + $0x60] sm:$0x1] %vm264_vm2, %v913_v0  ;;  %v400_v36 = vmul.f32 %v1108_v18, %v389_v22  ;;  %p840_p4 = pnand %p839_p1, %p1018_p5  ;;  %p845_p13 = por %p844_p12, %p843_p10 }
  0x33   : > { %272 = vst.msk [vmem:[#allocation2 + $0x70] sm:$0x1] %vm264_vm2, %v913_v0  ;;  %v328_v6 = vld [vmem:[#allocation2] sm:$0xff] }
  0x34   : > { %273 = vst.msk [vmem:[#allocation2 + $0x80] sm:$0x1] %vm264_vm2, %v913_v0  ;;  %v339_v11 = vmul.f32 %v1080_v4, %v328_v6  ;;  %p841_p8 = pneg %p840_p4 }
  0x35   : > { %274 = vst.msk [vmem:[#allocation2 + $0x90] sm:$0x1] %vm264_vm2, %v913_v0 }
  0x36   : > { %275 = vst.msk [vmem:[#allocation2 + $0x9] sm:$0x1] %vm264_vm2, %v913_v0  ;;  %v347_v15 = vadd.f32 %v1093_v10, %v339_v11  ;;  %p846_p0 = pnand %p845_p13, %p841_p8 }
  0x37   : > { %276 = vst.msk [vmem:[#allocation2 + $0x19] sm:$0x1] %vm264_vm2, %v913_v0 }
  0x38   : > { %277 = vst.msk [vmem:[#allocation2 + $0x29] sm:$0x1] %vm264_vm2, %v913_v0 }
  0x39   : > { %278 = vst.msk [vmem:[#allocation2 + $0x39] sm:$0x1] %vm264_vm2, %v913_v0 }
  0x3a   : > { %279 = vst.msk [vmem:[#allocation2 + $0x49] sm:$0x1] %vm264_vm2, %v913_v0 }
  0x3b   : > { %280 = vst.msk [vmem:[#allocation2 + $0x59] sm:$0x1] %vm264_vm2, %v913_v0 }
  0x3c   : > { %281 = vst.msk [vmem:[#allocation2 + $0x69] sm:$0x1] %vm264_vm2, %v913_v0 }
  0x3d   : > { %282 = vst.msk [vmem:[#allocation2 + $0x79] sm:$0x1] %vm264_vm2, %v913_v0  ;;  %v450_v23 = vld [vmem:[#allocation2 + $0x2] sm:$0xff] }
  0x3e   : > { %283 = vst.msk [vmem:[#allocation2 + $0x89] sm:$0x1] %vm264_vm2, %v913_v0  ;;  %v461_v37 = vmul.f32 %v1110_v19, %v450_v23 }
  0x3f   : > { %284 = vst.msk [vmem:[#allocation2 + $0x99] sm:$0x1] %vm264_vm2, %v913_v0 }
  0x40   : > { %296 = vst.msk [vmem:[#allocation2 + $0x11] sm:$0xff] %vm257_vm0, %v287_v2 }
  0x41   : > { %297 = vst.msk [vmem:[#allocation2 + $0x21] sm:$0xff] %vm257_vm0, %v288_v3 }
  0x42   : > { %298 = vst.msk [vmem:[#allocation2 + $0x31] sm:$0xff] %vm257_vm0, %v289_v5 }
  0x43   : > { %299 = vst.msk [vmem:[#allocation2 + $0x41] sm:$0xff] %vm257_vm0, %v290_v7 }
  0x44   : > { %300 = vst.msk [vmem:[#allocation2 + $0x51] sm:$0xff] %vm257_vm0, %v291_v8 }
  0x45   : > { %301 = vst.msk [vmem:[#allocation2 + $0x61] sm:$0xff] %vm257_vm0, %v292_v9 }
  0x46   : > { %302 = vst.msk [vmem:[#allocation2 + $0x71] sm:$0xff] %vm257_vm0, %v293_v12 }
  0x47   : > { %303 = vst.msk [vmem:[#allocation2 + $0x81] sm:$0xff] %vm257_vm0, %v294_v13  ;;  %v329_v17 = vld [vmem:[#allocation2 + $0x10] sm:$0xff] }
  0x48   : > { %v330_v20 = vld [vmem:[#allocation2 + $0x20] sm:$0xff]  ;;  %v356_v21 = vmul.f32 %v1100_v14, %v329_v17  ;;  %v340_v24 = vmul.f32 %v1080_v4, %v329_v17  ;;  %v390_v31 = vld [vmem:[#allocation2 + $0x11] sm:$0xff] }
  0x49   : > { %v331_v28 = vld [vmem:[#allocation2 + $0x30] sm:$0xff]  ;;  %v373_v30 = vmul.f32 %v1105_v16, %v330_v20  ;;  %v391_v32 = vld [vmem:[#allocation2 + $0x21] sm:$0xff]  ;;  %v357_v35 = vmul.f32 %v1100_v14, %v330_v20  ;;  %v341_v44 = vmul.f32 %v1080_v4, %v330_v20  ;;  %v417_v45 = vmul.f32 %v1114_v25, %v390_v31 }
  0x4a   : > { %v364_v29 = vadd.f32 %v356_v21, %v347_v15  ;;  %v451_v33 = vld [vmem:[#allocation2 + $0x12] sm:$0xff]  ;;  %v348_v34 = vadd.f32 %v1093_v10, %v340_v24  ;;  %v452_v40 = vld [vmem:[#allocation2 + $0x22] sm:$0xff]  ;;  %v374_v42 = vmul.f32 %v1105_v16, %v331_v28  ;;  %v434_v46 = vmul.f32 %v1116_v26, %v391_v32 }
  0x4b   : > { %v392_v43 = vld [vmem:[#allocation2 + $0x31] sm:$0xff]  ;;  %v478_v47 = vmul.f32 %v1118_v27, %v451_v33  ;;  %v401_v48 = vmul.f32 %v1108_v18, %v390_v31  ;;  %v332_v49 = vld [vmem:[#allocation2 + $0x40] sm:$0xff]  ;;  %v349_v52 = vadd.f32 %v1093_v10, %v341_v44  ;;  %v358_v53 = vmul.f32 %v1100_v14, %v331_v28 }
  0x4c   : > { %v381_v39 = vadd.f32 %v373_v30, %v364_v29  ;;  %v365_v41 = vadd.f32 %v357_v35, %v348_v34  ;;  %v495_v54 = vmul.f32 %v1125_v38, %v452_v40  ;;  %v418_v55 = vmul.f32 %v1114_v25, %v391_v32  ;;  %v453_v60 = vld [vmem:[#allocation2 + $0x32] sm:$0xff]  ;;  %v393_v8 = vld [vmem:[#allocation2 + $0x41] sm:$0xff] }
  0x4d   : > { %v435_v56 = vmul.f32 %v1116_v26, %v392_v43  ;;  %v342_v57 = vmul.f32 %v1080_v4, %v331_v28  ;;  %v366_v61 = vadd.f32 %v358_v53, %v349_v52  ;;  %v375_v62 = vmul.f32 %v1105_v16, %v332_v49  ;;  %v333_v63 = vld [vmem:[#allocation2 + $0x50] sm:$0xff]  ;;  %v334_v22 = vld [vmem:[#allocation2 + $0x60] sm:$0xff] }
  0x4e   : > { %v408_v50 = vadd.f32 %v400_v36, %v381_v39  ;;  %v382_v51 = vadd.f32 %v374_v42, %v365_v41  ;;  %v462_v0 = vmul.f32 %v1110_v19, %v451_v33  ;;  %v479_v1 = vmul.f32 %v1118_v27, %v452_v40  ;;  %v394_v34 = vld [vmem:[#allocation2 + $0x51] sm:$0xff] }
  0x4f   : > { %v350_v2 = vadd.f32 %v1093_v10, %v342_v57  ;;  %v359_v3 = vmul.f32 %v1100_v14, %v332_v49  ;;  %v383_v7 = vadd.f32 %v375_v62, %v366_v61  ;;  %v402_v9 = vmul.f32 %v1108_v18, %v391_v32  ;;  %v395_v57 = vld [vmem:[#allocation2 + $0x61] sm:$0xff] }
  0x50   : > { %v425_v58 = vadd.f32 %v417_v45, %v408_v50  ;;  %v409_v59 = vadd.f32 %v401_v48, %v382_v51  ;;  %v496_v11 = vmul.f32 %v1125_v38, %v453_v60  ;;  %v419_v12 = vmul.f32 %v1114_v25, %v392_v43 }
  0x51   : > { %v367_v13 = vadd.f32 %v359_v3, %v350_v2  ;;  %v376_v15 = vmul.f32 %v1105_v16, %v333_v63  ;;  %v410_v21 = vadd.f32 %v402_v9, %v383_v7  ;;  %v343_v23 = vmul.f32 %v1080_v4, %v332_v49 }
  0x52   : > { %v442_v5 = vadd.f32 %v434_v46, %v425_v58  ;;  %v426_v6 = vadd.f32 %v418_v55, %v409_v59  ;;  %v436_v24 = vmul.f32 %v1116_v26, %v393_v8  ;;  %v403_v29 = vmul.f32 %v1108_v18, %v392_v43  ;;  %v454_v46 = vld [vmem:[#allocation2 + $0x42] sm:$0xff] }
  0x53   : > { %v384_v28 = vadd.f32 %v376_v15, %v367_v13  ;;  %v360_v30 = vmul.f32 %v1100_v14, %v333_v63  ;;  %v427_v33 = vadd.f32 %v419_v12, %v410_v21  ;;  %v351_v35 = vadd.f32 %v1093_v10, %v343_v23  ;;  %v396_v23 = vld [vmem:[#allocation2 + $0x71] sm:$0xff] }
  0x54   : > { %v469_v17 = vadd.f32 %v461_v37, %v442_v5  ;;  %v443_v20 = vadd.f32 %v435_v56, %v426_v6  ;;  %v463_v36 = vmul.f32 %v1110_v19, %v452_v40  ;;  %v420_v39 = vmul.f32 %v1114_v25, %v393_v8 }
  0x55   : > { %v411_v37 = vadd.f32 %v403_v29, %v384_v28  ;;  %v377_v41 = vmul.f32 %v1105_v16, %v334_v22  ;;  %v444_v45 = vadd.f32 %v436_v24, %v427_v33  ;;  %v368_v43 = vadd.f32 %v360_v30, %v351_v35 }
  0x56   : > { %v486_v31 = vadd.f32 %v478_v47, %v469_v17  ;;  %v470_v32 = vadd.f32 %v462_v0, %v443_v20  ;;  %v480_v47 = vmul.f32 %v1118_v27, %v453_v60  ;;  %v437_v49 = vmul.f32 %v1116_v26, %v394_v34  ;;  %v336_v17 = vld [vmem:[#allocation2 + $0x80] sm:$0xff] }
  0x57   : > { %v428_v48 = vadd.f32 %v420_v39, %v411_v37  ;;  %v344_v50 = vmul.f32 %v1080_v4, %v333_v63  ;;  %v471_v51 = vadd.f32 %v463_v36, %v444_v45  ;;  %v385_v52 = vadd.f32 %v377_v41, %v368_v43  ;;  %v455_v63 = vld [vmem:[#allocation2 + $0x52] sm:$0xff] }
  0x58   : > { %v503_v42 = vadd.f32 %v495_v54, %v486_v31  ;;  %v487_v44 = vadd.f32 %v479_v1, %v470_v32  ;;  %v404_v53 = vmul.f32 %v1108_v18, %v393_v8  ;;  %v335_v54 = vld [vmem:[#allocation2 + $0x70] sm:$0xff]  ;;  %v464_v56 = vmul.f32 %v1110_v19, %v453_v60 }
  0x59   : > { %v445_v55 = vadd.f32 %v437_v49, %v428_v48  ;;  %v352_v58 = vadd.f32 %v1093_v10, %v344_v50  ;;  %v361_v59 = vmul.f32 %v1100_v14, %v334_v22  ;;  %v488_v61 = vadd.f32 %v480_v47, %v471_v51  ;;  %v337_v36 = vld [vmem:[#allocation2 + $0x90] sm:$0xff]  ;;  %v397_v49 = vld [vmem:[#allocation2 + $0x81] sm:$0xff] }
  0x5a   : > { %511 = vst.msk [vmem:[%s1161_s22] sm:$0xff] %vm257_vm0, %v503_v42  ;;  %v504_v40 = vadd.f32 %v496_v11, %v487_v44  ;;  %v497_v62 = vmul.f32 %v1125_v38, %v454_v46  ;;  %v412_v0 = vadd.f32 %v404_v53, %v385_v52  ;;  %v421_v1 = vmul.f32 %v1114_v25, %v394_v34  ;;  %v457_v52 = vld [vmem:[#allocation2 + $0x72] sm:$0xff] }
  0x5b   : > { %v472_v2 = vadd.f32 %v464_v56, %v445_v55  ;;  %v481_v3 = vmul.f32 %v1118_v27, %v454_v46  ;;  %v369_v5 = vadd.f32 %v361_v59, %v352_v58  ;;  %v378_v60 = vmul.f32 %v1105_v16, %v335_v54 }
  0x5c   : > { %512 = vst.msk [vmem:[%s1161_s22 + $0x8] sm:$0xff] %vm257_vm0, %v504_v40  ;;  %v505_v6 = vadd.f32 %v497_v62, %v488_v61  ;;  %v429_v7 = vadd.f32 %v421_v1, %v412_v0  ;;  %v438_v8 = vmul.f32 %v1116_v26, %v395_v57  ;;  %v345_v9 = vmul.f32 %v1080_v4, %v334_v22  ;;  %v456_v22 = vld [vmem:[#allocation2 + $0x62] sm:$0xff] }
  0x5d   : > { %v489_v11 = vadd.f32 %v481_v3, %v472_v2  ;;  %v498_v12 = vmul.f32 %v1125_v38, %v455_v63  ;;  %v386_v13 = vadd.f32 %v378_v60, %v369_v5  ;;  %v405_v15 = vmul.f32 %v1108_v18, %v394_v34  ;;  %v458_v1 = vld [vmem:[#allocation2 + $0x82] sm:$0xff] }
  0x5e   : > { %513 = vst.msk [vmem:[%s1161_s22 + $0x10] sm:$0xff] %vm257_vm0, %v505_v6  ;;  %v446_v20 = vadd.f32 %v438_v8, %v429_v7  ;;  %v465_v21 = vmul.f32 %v1110_v19, %v454_v46  ;;  %v353_v24 = vadd.f32 %v1093_v10, %v345_v9  ;;  %v362_v28 = vmul.f32 %v1100_v14, %v335_v54 }
  0x5f   : > { %v506_v29 = vadd.f32 %v498_v12, %v489_v11  ;;  %v413_v30 = vadd.f32 %v405_v15, %v386_v13  ;;  %v422_v31 = vmul.f32 %v1114_v25, %v395_v57  ;;  %v482_v33 = vmul.f32 %v1118_v27, %v455_v63  ;;  %v459_v12 = vld [vmem:[#allocation2 + $0x92] sm:$0xff] }
  0x60   : > { %v473_v32 = vadd.f32 %v465_v21, %v446_v20  ;;  %v370_v34 = vadd.f32 %v362_v28, %v353_v24  ;;  %v379_v35 = vmul.f32 %v1105_v16, %v336_v17  ;;  %v439_v39 = vmul.f32 %v1116_v26, %v396_v23 }
  0x61   : > { %514 = vst.msk [vmem:[%s1161_s22 + $0x18] sm:$0xff] %vm257_vm0, %v506_v29  ;;  %v430_v37 = vadd.f32 %v422_v31, %v413_v30  ;;  %v346_v41 = vmul.f32 %v1080_v4, %v335_v54  ;;  %v363_v42 = vmul.f32 %v1100_v14, %v336_v17  ;;  %v499_v45 = vmul.f32 %v1125_v38, %v456_v22 }
  0x62   : > { %v490_v44 = vadd.f32 %v482_v33, %v473_v32  ;;  %v387_v43 = vadd.f32 %v379_v35, %v370_v34  ;;  %v406_v46 = vmul.f32 %v1108_v18, %v395_v57  ;;  %v466_v48 = vmul.f32 %v1110_v19, %v455_v63  ;;  %v398_v63 = vld [vmem:[#allocation2 + $0x91] sm:$0xff] }
  0x63   : > { %v447_v47 = vadd.f32 %v439_v39, %v430_v37  ;;  %v354_v50 = vadd.f32 %v1093_v10, %v346_v41  ;;  %v380_v40 = vmul.f32 %v1105_v16, %v337_v36  ;;  %v423_v14 = vmul.f32 %v1114_v25, %v396_v23 }
  0x64   : > { %v507_v51 = vadd.f32 %v499_v45, %v490_v44  ;;  %v414_v4 = vadd.f32 %v406_v46, %v387_v43  ;;  %v483_v54 = vmul.f32 %v1118_v27, %v456_v22  ;;  %v440_v57 = vmul.f32 %v1116_v26, %v397_v49 }
  0x65   : > { %v474_v53 = vadd.f32 %v466_v48, %v447_v47  ;;  %v371_v55 = vadd.f32 %v363_v42, %v354_v50  ;;  %v500_v10 = vmul.f32 %v1125_v38, %v457_v52  ;;  %v407_v59 = vmul.f32 %v1108_v18, %v396_v23 }
  0x66   : > { %515 = vst.msk [vmem:[%s1161_s22 + $0x20] sm:$0xff] %vm257_vm0, %v507_v51  ;;  %v431_v56 = vadd.f32 %v423_v14, %v414_v4  ;;  %v467_v62 = vmul.f32 %v1110_v19, %v456_v22  ;;  %v424_v3 = vmul.f32 %v1114_v25, %v397_v49  ;;  %v484_v60 = vmul.f32 %v1118_v27, %v457_v52 }
  0x67   : > { %v491_v58 = vadd.f32 %v483_v54, %v474_v53  ;;  %v388_v16 = vadd.f32 %v380_v40, %v371_v55  ;;  %v441_v18 = vmul.f32 %v1116_v26, %v398_v63  ;;  %v501_v8 = vmul.f32 %v1125_v38, %v458_v1 }
  0x68   : > { %v448_v61 = vadd.f32 %v440_v57, %v431_v56  ;;  %v468_v11 = vmul.f32 %v1110_v19, %v457_v52  ;;  %v485_v15 = vmul.f32 %v1118_v27, %v458_v1  ;;  %v502_v17 = vmul.f32 %v1125_v38, %v459_v12 }
  0x69   : > { %v508_v0 = vadd.f32 %v500_v10, %v491_v58  ;;  %v415_v2 = vadd.f32 %v407_v59, %v388_v16 }
  0x6a   : > { %v475_v5 = vadd.f32 %v467_v62, %v448_v61 }
  0x6b   : > { %516 = vst.msk [vmem:[%s1161_s22 + $0x28] sm:$0xff] %vm257_vm0, %v508_v0  ;;  %v432_v6 = vadd.f32 %v424_v3, %v415_v2 }
  0x6c   : > { %v492_v7 = vadd.f32 %v484_v60, %v475_v5 }
  0x6d   : > { %v449_v9 = vadd.f32 %v441_v18, %v432_v6 }
  0x6e   : > { %v509_v25 = vadd.f32 %v501_v8, %v492_v7 }
  0x6f   : > { %v476_v13 = vadd.f32 %v468_v11, %v449_v9 }
  0x70   : > { %517 = vst.msk [vmem:[%s1161_s22 + $0x30] sm:$0xff] %vm257_vm0, %v509_v25 }
  0x71   : > { %v493_v26 = vadd.f32 %v485_v15, %v476_v13 }
  0x73   : > { %v510_v20 = vadd.f32 %v502_v17, %v493_v26 }
  0x75   : > { %518 = vst.msk [vmem:[%s1161_s22 + $0x38] sm:$0xff] %vm257_vm0, %v510_v20 }
  0x76   : > { %849 = shalt.err (!%p846_p0)
}
  0x77   : > { %s914_s6 = smov 128   ;;  %s915_s7 = smov 8  }
  0x78   : > { %688 = dma.vmem_to_hbm [thread:$0]  (%p1018_p5), %s536_s15, 1024, %s538_s19, %s520_s24, %s914_s6, %s914_s6, %s915_s7  }
  0x79 PF: > { %s552_s1 = sand.u32 1, %s888_s12   ;;  %p699_p3 = pnand %p665_p11, %p985_p6 }
  0x7a   : > { %s553_s20 = scalar_lea.sflag [#allocation5], %s552_s1 }
  0x7b   : > { %p700_p7 = pneg %p699_p3 }
  0x7d   : > { %883 = dma.done.wait (%p700_p7), %s553_s20, 1024  }
  0x7e   : > { %885 = vsyncadd (%p700_p7), %s553_s20, 4294966272  ;;  %s20_s17 = sadd.s32 1, %s908_s17   ;;  %s1272_s12 = smov %s892_s13 }
  0x7f   : > { %p17_p9 = scmp.ge.s32.totalorder %s20_s17, 4   ;;  %s1273_s13 = smov %s896_s14 }
  0x80   : > { %s1274_s14 = smov %s1027_s18  ;;  %s1275_s15 = smov %s904_s16 }
  0x81   : > { %s1276_s16 = smov %s1278_s5  ;;  %19 = sbr.rel (!%p17_p9) target bundleno = 9 (0x9), region = 98 }
  0x86   :  { %559 = vsyncpa [#allocation4], 1 }
  0x87   :  { %561 = vsyncpa [#allocation4 + $0x1], 1 }
  0x88   :  { %562 = vsyncpa [#allocation7], 1 }
  0x89   :  { %563 = vsyncpa [#allocation5], 1 }
  0x8a   :  { %565 = vsyncpa [#allocation5 + $0x1], 1 }

</bundles_post_ra>
